<compile_context>
chip_gen: v7x
topology: tpu7x:2x2x1
jax: 0.10.0
libtpu: 0.0.40
codegen_flags: <defaults>
</compile_context>

<pallas_src>
import jax
import jax.numpy as jnp
import numpy as np
from jax import lax
from jax.experimental import pallas as pl
from jax.experimental.pallas import tpu as pltpu


def lstm_kernel(len_ref, idx_ref, combo_ref, whh_ref, o_ref):
    """Fused embedding gather + full LSTM recurrence, state held in vregs.

    len_ref   : (B, 1)    int32  valid sequence length per batch row
    idx_ref   : (T*B, 1)  int32  token ids, time-major flattened (row n = t*B + b)
    combo_ref : (V, 4H)   f32    precomputed embed @ W_ih^T, gate cols [i|f|o|g]
    whh_ref   : (H, 4H)   f32    W_hh^T, gate cols [i|f|o|g]
    o_ref     : (B, H)    f32    final hidden state h_n[0]
    """
    TB = idx_ref.shape[0]
    B, H = o_ref.shape
    V = combo_ref.shape[0]
    T = TB // B

    # ---- Hoisted input path (off the serial h-dependence chain) -------------
    # x @ W_ih^T == onehot(q_ind) @ combo: one (T*B, V) x (V, 4H) MXU matmul,
    # done once before the recurrence.  Fine at toy V; see TODO for real vocab.
    onehot = (idx_ref[...] ==
              lax.broadcasted_iota(jnp.int32, (TB, V), 1)
              ).astype(jnp.float32)                                   # (TB, V)
    xw = jnp.dot(onehot, combo_ref[...],
                 preferred_element_type=jnp.float32)                  # (TB, 4H)

    # ---- Hoisted loop-invariant loads / masks --------------------------------
    whh = whh_ref[...]                                                # (H, 4H)
    lengths = len_ref[...]                                            # (B, 1)
    valid_all = lengths > lax.broadcasted_iota(jnp.int32, (B, T), 1)  # (B, T)

    # ---- Recurrence (fully unrolled, h/c register-resident) ------------------
    h = jnp.zeros((B, H), jnp.float32)
    c = jnp.zeros((B, H), jnp.float32)

    for t in range(T):
        # Only the recurrent projection sits on the serial critical path.
        gates = xw[t * B:(t + 1) * B, :] + jnp.dot(
            h, whh, preferred_element_type=jnp.float32)               # (B, 4H)
        # Gate layout [i | f | o | g]: one contiguous sigmoid, tanh only on g.
        sig = jax.nn.sigmoid(gates[:, :3 * H])
        g_g = jnp.tanh(gates[:, 3 * H:])
        i_g = sig[:, 0 * H:1 * H]
        f_g = sig[:, 1 * H:2 * H]
        o_g = sig[:, 2 * H:3 * H]
        c = f_g * c + i_g * g_g
        h_new = o_g * jnp.tanh(c)
        # Packed-sequence semantics: freeze h once this row's length is passed.
        # c needs no mask: `valid` is monotone non-increasing in t, so a frozen
        # h never reads a post-length c.  (Reinstate c mask if c_n is exposed.)
        h = jnp.where(valid_all[:, t:t + 1], h_new, h)

    o_ref[...] = h


def _reorder_gates(w):
    """Reorder the last (4H) axis from PyTorch [i|f|g|o] to kernel [i|f|o|g]."""
    i, f, g, o = jnp.split(w, 4, axis=-1)
    return jnp.concatenate([i, f, o, g], axis=-1)


def prepare_lstm_params(embed_w, w_ih, w_hh):
    """One-time, weight-only prep (outside the per-call path).

    embed_w : (V, E), w_ih : (4H, E), w_hh : (4H, H) in PyTorch gate order.
    Returns combo (V, 4H) = embed @ W_ih^T and whh_t (H, 4H), both with gate
    columns reordered to [i|f|o|g].
    """
    combo = jnp.dot(embed_w, jnp.transpose(w_ih),
                    precision=lax.Precision.HIGHEST)       # (V, 4H)
    return _reorder_gates(combo), _reorder_gates(jnp.transpose(w_hh))


@jax.jit
def lstm_final_hidden(q_ind, seq_length, combo, whh_t):
    """Wrapper. Takes the precomputed combo table and pre-transposed W_hh^T."""
    B, T = q_ind.shape
    V, G4 = combo.shape
    H = whh_t.shape[0]

    lens = seq_length.astype(jnp.int32).reshape(B, 1)
    # Time-major flattened token ids (row n = t*B + b): tiny int reshuffle.
    idx_tm = jnp.transpose(q_ind).reshape(T * B, 1).astype(jnp.int32)

    grid_spec = pltpu.PrefetchScalarGridSpec(
        num_scalar_prefetch=0,
        grid=(1,),
        in_specs=[
            pl.BlockSpec((B, 1), lambda i: (0, 0)),          # lengths
            pl.BlockSpec((T * B, 1), lambda i: (0, 0)),      # token ids
            pl.BlockSpec((V, G4), lambda i: (0, 0)),         # combo = E @ W_ih^T
            pl.BlockSpec((H, G4), lambda i: (0, 0)),         # W_hh^T
        ],
        out_specs=pl.BlockSpec((B, H), lambda i: (0, 0)),
        scratch_shapes=[],
    )
    return pl.pallas_call(
        lstm_kernel,
        out_shape=jax.ShapeDtypeStruct((B, H), jnp.float32),
        grid_spec=grid_spec,
        compiler_params=pltpu.CompilerParams(
            dimension_semantics=("arbitrary",)),
    )(lens, idx_tm, combo, whh_t)


def lstm_ref(q_ind, seq_length, embed_w, w_ih, w_hh):
    """Pure-JAX reference (same semantics as torch packed LSTM final h)."""
    emb = embed_w[q_ind]                         # (B, T, E)
    B, T, E = emb.shape
    H = w_hh.shape[1]
    x = jnp.transpose(emb, (1, 0, 2))            # (T, B, E)

    def cell(carry, inp):
        h, c = carry
        x_t, t = inp
        gates = x_t @ w_ih.T + h @ w_hh.T
        i = jax.nn.sigmoid(gates[:, :H])
        f = jax.nn.sigmoid(gates[:, H:2 * H])
        g = jnp.tanh(gates[:, 2 * H:3 * H])
        o = jax.nn.sigmoid(gates[:, 3 * H:])
        c_new = f * c + i * g
        h_new = o * jnp.tanh(c_new)
        valid = (seq_length > t)[:, None]
        return (jnp.where(valid, h_new, h), jnp.where(valid, c_new, c)), None

    init = (jnp.zeros((B, H), jnp.float32), jnp.zeros((B, H), jnp.float32))
    (h, _), _ = lax.scan(cell, init, (x, jnp.arange(T)))
    return h


def xavier_uniform(key, shape):
    fan_out, fan_in = shape
    bound = float(np.sqrt(6.0 / (fan_in + fan_out)))
    return jax.random.uniform(key, shape, jnp.float32, -bound, bound)


if __name__ == "__main__":
    vocab_size, embedding_dim, hidden_dim = 64, 32, 32
    batch, seq = 8, 8

    key = jax.random.PRNGKey(0)
    k_emb, k_ih, k_hh, k_tok = jax.random.split(key, 4)

    # Deterministic parameter init (mirrors module __init__ shapes).
    embed_w = xavier_uniform(k_emb, (vocab_size, embedding_dim))
    # NOTE: the torch module applies xavier_uniform_ AFTER padding_idx init,
    # so the padding row is not zero; we mirror that (it is masked anyway).
    w_ih = jnp.concatenate(
        [xavier_uniform(k, (hidden_dim, embedding_dim))
         for k in jax.random.split(k_ih, 4)], axis=0)      # (4H, E)
    w_hh = jnp.concatenate(
        [xavier_uniform(k, (hidden_dim, hidden_dim))
         for k in jax.random.split(k_hh, 4)], axis=0)      # (4H, H)
    # biases are zeroed in the module -> omitted.

    # One-time weight prep: fold embedding through W_ih^T and reorder gates.
    combo, whh_t = prepare_lstm_params(embed_w, w_ih, w_hh)
    combo = jax.block_until_ready(combo)

    # Inputs: token ids (B, T), lengths sorted descending (pack_padded_sequence).
    seq_length = jnp.array([8, 7, 6, 5, 4, 3, 2, 1], dtype=jnp.int32)
    q_ind = jax.random.randint(k_tok, (batch, seq), 1, vocab_size, dtype=jnp.int32)
    pad_mask = jnp.arange(seq)[None, :] < seq_length[:, None]
    q_ind = jnp.where(pad_mask, q_ind, 0)                  # pad token = 0

    out = lstm_final_hidden(q_ind, seq_length, combo, whh_t)
    out = jax.block_until_ready(out)

    ref = lstm_ref(q_ind, seq_length, embed_w, w_ih, w_hh)
    np.testing.assert_allclose(np.asarray(out), np.asarray(ref),
                               rtol=1e-4, atol=1e-4)
    print("KERNEL_OK")
</pallas_src>

<mosaic_0001>
module attributes {stable_mosaic.version = 11 : i64} {
  func.func @lstm_kernel(%arg0: i32, %arg1: memref<8x1xi32, #tpu.memory_space<vmem>>, %arg2: memref<64x1xi32, #tpu.memory_space<vmem>>, %arg3: memref<64x128xf32, #tpu.memory_space<vmem>>, %arg4: memref<32x128xf32, #tpu.memory_space<vmem>>, %arg5: memref<8x32xf32, #tpu.memory_space<vmem>>) attributes {dimension_semantics = [#tpu.dimension_semantics<arbitrary>], iteration_bounds = array<i64: 1>, scalar_prefetch = 0 : i64, scratch_operands = 0 : i64, tpu.core_type = #tpu.core_type<tc>, window_params = [{pipeline_mode = #tpu.pipeline_mode<synchronous>, transform_indices = @transform_0, window_bounds = array<i64: 8, 1>}, {pipeline_mode = #tpu.pipeline_mode<synchronous>, transform_indices = @transform_1, window_bounds = array<i64: 64, 1>}, {pipeline_mode = #tpu.pipeline_mode<synchronous>, transform_indices = @transform_2, window_bounds = array<i64: 64, 128>}, {pipeline_mode = #tpu.pipeline_mode<synchronous>, transform_indices = @transform_3, window_bounds = array<i64: 32, 128>}, {pipeline_mode = #tpu.pipeline_mode<synchronous>, transform_indices = @transform_4, window_bounds = array<i64: 8, 32>}]} {
    %c0 = arith.constant 0 : index
    %c0_0 = arith.constant 0 : index
    %0 = vector.load %arg2[%c0, %c0_0] : memref<64x1xi32, #tpu.memory_space<vmem>>, vector<64x1xi32>
    %1 = tpu.iota {dimensions = array<i32: 1>} : vector<64x64xi32>
    %2 = vector.broadcast %0 : vector<64x1xi32> to vector<64x64xi32>
    %3 = arith.cmpi eq, %2, %1 : vector<64x64xi32>
    %4 = arith.extui %3 : vector<64x64xi1> to vector<64x64xi32>
    %5 = arith.sitofp %4 : vector<64x64xi32> to vector<64x64xf32>
    %c0_1 = arith.constant 0 : index
    %c0_2 = arith.constant 0 : index
    %6 = vector.load %arg3[%c0_1, %c0_2] : memref<64x128xf32, #tpu.memory_space<vmem>>, vector<64x128xf32>
    %cst = arith.constant dense<0.000000e+00> : vector<64x128xf32>
    %7 = tpu.matmul %5, %6, %cst {dimension_numbers = #tpu.dot_dimension_numbers<[1], [0], [0], [1], [0, 0, 1, 1], [], []>} : vector<64x64xf32>, vector<64x128xf32>, vector<64x128xf32> -> vector<64x128xf32>
    %c0_3 = arith.constant 0 : index
    %c0_4 = arith.constant 0 : index
    %8 = vector.load %arg4[%c0_3, %c0_4] : memref<32x128xf32, #tpu.memory_space<vmem>>, vector<32x128xf32>
    %c0_5 = arith.constant 0 : index
    %c0_6 = arith.constant 0 : index
    %9 = vector.load %arg1[%c0_5, %c0_6] : memref<8x1xi32, #tpu.memory_space<vmem>>, vector<8x1xi32>
    %10 = tpu.iota {dimensions = array<i32: 1>} : vector<8x8xi32>
    %11 = vector.broadcast %9 : vector<8x1xi32> to vector<8x8xi32>
    %12 = arith.cmpi sgt, %11, %10 : vector<8x8xi32>
    %cst_7 = arith.constant 0.000000e+00 : f32
    %13 = vector.broadcast %cst_7 : f32 to vector<8x32xf32>
    %cst_8 = arith.constant 0.000000e+00 : f32
    %14 = vector.broadcast %cst_8 : f32 to vector<8x32xf32>
    %15 = vector.extract_strided_slice %7 {offsets = [0, 0], sizes = [8, 128], strides = [1, 1]} : vector<64x128xf32> to vector<8x128xf32>
    %cst_9 = arith.constant dense<0.000000e+00> : vector<8x128xf32>
    %16 = tpu.matmul %13, %8, %cst_9 {dimension_numbers = #tpu.dot_dimension_numbers<[1], [0], [0], [1], [0, 0, 1, 1], [], []>} : vector<8x32xf32>, vector<32x128xf32>, vector<8x128xf32> -> vector<8x128xf32>
    %17 = arith.addf %15, %16 : vector<8x128xf32>
    %18 = vector.extract_strided_slice %17 {offsets = [0, 0], sizes = [8, 96], strides = [1, 1]} : vector<8x128xf32> to vector<8x96xf32>
    %19 = arith.negf %18 : vector<8x96xf32>
    %20 = math.exp %19 : vector<8x96xf32>
    %cst_10 = arith.constant 1.000000e+00 : f32
    %21 = vector.broadcast %cst_10 : f32 to vector<8x96xf32>
    %22 = arith.addf %21, %20 : vector<8x96xf32>
    %23 = arith.divf %21, %22 : vector<8x96xf32>
    %24 = vector.extract_strided_slice %17 {offsets = [0, 96], sizes = [8, 32], strides = [1, 1]} : vector<8x128xf32> to vector<8x32xf32>
    %25 = math.tanh %24 : vector<8x32xf32>
    %26 = vector.extract_strided_slice %23 {offsets = [0, 0], sizes = [8, 32], strides = [1, 1]} : vector<8x96xf32> to vector<8x32xf32>
    %27 = vector.extract_strided_slice %23 {offsets = [0, 32], sizes = [8, 32], strides = [1, 1]} : vector<8x96xf32> to vector<8x32xf32>
    %28 = vector.extract_strided_slice %23 {offsets = [0, 64], sizes = [8, 32], strides = [1, 1]} : vector<8x96xf32> to vector<8x32xf32>
    %29 = arith.mulf %27, %14 : vector<8x32xf32>
    %30 = arith.mulf %26, %25 : vector<8x32xf32>
    %31 = arith.addf %29, %30 : vector<8x32xf32>
    %32 = math.tanh %31 : vector<8x32xf32>
    %33 = arith.mulf %28, %32 : vector<8x32xf32>
    %34 = vector.extract_strided_slice %12 {offsets = [0, 0], sizes = [8, 1], strides = [1, 1]} : vector<8x8xi1> to vector<8x1xi1>
    %35 = vector.shape_cast %34 : vector<8x1xi1> to vector<8x1xi1>
    %36 = vector.broadcast %35 : vector<8x1xi1> to vector<8x32xi1>
    %37 = arith.select %36, %33, %13 : vector<8x32xi1>, vector<8x32xf32>
    %38 = vector.extract_strided_slice %7 {offsets = [8, 0], sizes = [8, 128], strides = [1, 1]} : vector<64x128xf32> to vector<8x128xf32>
    %cst_11 = arith.constant dense<0.000000e+00> : vector<8x128xf32>
    %39 = tpu.matmul %37, %8, %cst_11 {dimension_numbers = #tpu.dot_dimension_numbers<[1], [0], [0], [1], [0, 0, 1, 1], [], []>} : vector<8x32xf32>, vector<32x128xf32>, vector<8x128xf32> -> vector<8x128xf32>
    %40 = arith.addf %38, %39 : vector<8x128xf32>
    %41 = vector.extract_strided_slice %40 {offsets = [0, 0], sizes = [8, 96], strides = [1, 1]} : vector<8x128xf32> to vector<8x96xf32>
    %42 = arith.negf %41 : vector<8x96xf32>
    %43 = math.exp %42 : vector<8x96xf32>
    %cst_12 = arith.constant 1.000000e+00 : f32
    %44 = vector.broadcast %cst_12 : f32 to vector<8x96xf32>
    %45 = arith.addf %44, %43 : vector<8x96xf32>
    %46 = arith.divf %44, %45 : vector<8x96xf32>
    %47 = vector.extract_strided_slice %40 {offsets = [0, 96], sizes = [8, 32], strides = [1, 1]} : vector<8x128xf32> to vector<8x32xf32>
    %48 = math.tanh %47 : vector<8x32xf32>
    %49 = vector.extract_strided_slice %46 {offsets = [0, 0], sizes = [8, 32], strides = [1, 1]} : vector<8x96xf32> to vector<8x32xf32>
    %50 = vector.extract_strided_slice %46 {offsets = [0, 32], sizes = [8, 32], strides = [1, 1]} : vector<8x96xf32> to vector<8x32xf32>
    %51 = vector.extract_strided_slice %46 {offsets = [0, 64], sizes = [8, 32], strides = [1, 1]} : vector<8x96xf32> to vector<8x32xf32>
    %52 = arith.mulf %50, %31 : vector<8x32xf32>
    %53 = arith.mulf %49, %48 : vector<8x32xf32>
    %54 = arith.addf %52, %53 : vector<8x32xf32>
    %55 = math.tanh %54 : vector<8x32xf32>
    %56 = arith.mulf %51, %55 : vector<8x32xf32>
    %57 = vector.extract_strided_slice %12 {offsets = [0, 1], sizes = [8, 1], strides = [1, 1]} : vector<8x8xi1> to vector<8x1xi1>
    %58 = vector.shape_cast %57 : vector<8x1xi1> to vector<8x1xi1>
    %59 = vector.broadcast %58 : vector<8x1xi1> to vector<8x32xi1>
    %60 = arith.select %59, %56, %37 : vector<8x32xi1>, vector<8x32xf32>
    %61 = vector.extract_strided_slice %7 {offsets = [16, 0], sizes = [8, 128], strides = [1, 1]} : vector<64x128xf32> to vector<8x128xf32>
    %cst_13 = arith.constant dense<0.000000e+00> : vector<8x128xf32>
    %62 = tpu.matmul %60, %8, %cst_13 {dimension_numbers = #tpu.dot_dimension_numbers<[1], [0], [0], [1], [0, 0, 1, 1], [], []>} : vector<8x32xf32>, vector<32x128xf32>, vector<8x128xf32> -> vector<8x128xf32>
    %63 = arith.addf %61, %62 : vector<8x128xf32>
    %64 = vector.extract_strided_slice %63 {offsets = [0, 0], sizes = [8, 96], strides = [1, 1]} : vector<8x128xf32> to vector<8x96xf32>
    %65 = arith.negf %64 : vector<8x96xf32>
    %66 = math.exp %65 : vector<8x96xf32>
    %cst_14 = arith.constant 1.000000e+00 : f32
    %67 = vector.broadcast %cst_14 : f32 to vector<8x96xf32>
    %68 = arith.addf %67, %66 : vector<8x96xf32>
    %69 = arith.divf %67, %68 : vector<8x96xf32>
    %70 = vector.extract_strided_slice %63 {offsets = [0, 96], sizes = [8, 32], strides = [1, 1]} : vector<8x128xf32> to vector<8x32xf32>
    %71 = math.tanh %70 : vector<8x32xf32>
    %72 = vector.extract_strided_slice %69 {offsets = [0, 0], sizes = [8, 32], strides = [1, 1]} : vector<8x96xf32> to vector<8x32xf32>
    %73 = vector.extract_strided_slice %69 {offsets = [0, 32], sizes = [8, 32], strides = [1, 1]} : vector<8x96xf32> to vector<8x32xf32>
    %74 = vector.extract_strided_slice %69 {offsets = [0, 64], sizes = [8, 32], strides = [1, 1]} : vector<8x96xf32> to vector<8x32xf32>
    %75 = arith.mulf %73, %54 : vector<8x32xf32>
    %76 = arith.mulf %72, %71 : vector<8x32xf32>
    %77 = arith.addf %75, %76 : vector<8x32xf32>
    %78 = math.tanh %77 : vector<8x32xf32>
    %79 = arith.mulf %74, %78 : vector<8x32xf32>
    %80 = vector.extract_strided_slice %12 {offsets = [0, 2], sizes = [8, 1], strides = [1, 1]} : vector<8x8xi1> to vector<8x1xi1>
    %81 = vector.shape_cast %80 : vector<8x1xi1> to vector<8x1xi1>
    %82 = vector.broadcast %81 : vector<8x1xi1> to vector<8x32xi1>
    %83 = arith.select %82, %79, %60 : vector<8x32xi1>, vector<8x32xf32>
    %84 = vector.extract_strided_slice %7 {offsets = [24, 0], sizes = [8, 128], strides = [1, 1]} : vector<64x128xf32> to vector<8x128xf32>
    %cst_15 = arith.constant dense<0.000000e+00> : vector<8x128xf32>
    %85 = tpu.matmul %83, %8, %cst_15 {dimension_numbers = #tpu.dot_dimension_numbers<[1], [0], [0], [1], [0, 0, 1, 1], [], []>} : vector<8x32xf32>, vector<32x128xf32>, vector<8x128xf32> -> vector<8x128xf32>
    %86 = arith.addf %84, %85 : vector<8x128xf32>
    %87 = vector.extract_strided_slice %86 {offsets = [0, 0], sizes = [8, 96], strides = [1, 1]} : vector<8x128xf32> to vector<8x96xf32>
    %88 = arith.negf %87 : vector<8x96xf32>
    %89 = math.exp %88 : vector<8x96xf32>
    %cst_16 = arith.constant 1.000000e+00 : f32
    %90 = vector.broadcast %cst_16 : f32 to vector<8x96xf32>
    %91 = arith.addf %90, %89 : vector<8x96xf32>
    %92 = arith.divf %90, %91 : vector<8x96xf32>
    %93 = vector.extract_strided_slice %86 {offsets = [0, 96], sizes = [8, 32], strides = [1, 1]} : vector<8x128xf32> to vector<8x32xf32>
    %94 = math.tanh %93 : vector<8x32xf32>
    %95 = vector.extract_strided_slice %92 {offsets = [0, 0], sizes = [8, 32], strides = [1, 1]} : vector<8x96xf32> to vector<8x32xf32>
    %96 = vector.extract_strided_slice %92 {offsets = [0, 32], sizes = [8, 32], strides = [1, 1]} : vector<8x96xf32> to vector<8x32xf32>
    %97 = vector.extract_strided_slice %92 {offsets = [0, 64], sizes = [8, 32], strides = [1, 1]} : vector<8x96xf32> to vector<8x32xf32>
    %98 = arith.mulf %96, %77 : vector<8x32xf32>
    %99 = arith.mulf %95, %94 : vector<8x32xf32>
    %100 = arith.addf %98, %99 : vector<8x32xf32>
    %101 = math.tanh %100 : vector<8x32xf32>
    %102 = arith.mulf %97, %101 : vector<8x32xf32>
    %103 = vector.extract_strided_slice %12 {offsets = [0, 3], sizes = [8, 1], strides = [1, 1]} : vector<8x8xi1> to vector<8x1xi1>
    %104 = vector.shape_cast %103 : vector<8x1xi1> to vector<8x1xi1>
    %105 = vector.broadcast %104 : vector<8x1xi1> to vector<8x32xi1>
    %106 = arith.select %105, %102, %83 : vector<8x32xi1>, vector<8x32xf32>
    %107 = vector.extract_strided_slice %7 {offsets = [32, 0], sizes = [8, 128], strides = [1, 1]} : vector<64x128xf32> to vector<8x128xf32>
    %cst_17 = arith.constant dense<0.000000e+00> : vector<8x128xf32>
    %108 = tpu.matmul %106, %8, %cst_17 {dimension_numbers = #tpu.dot_dimension_numbers<[1], [0], [0], [1], [0, 0, 1, 1], [], []>} : vector<8x32xf32>, vector<32x128xf32>, vector<8x128xf32> -> vector<8x128xf32>
    %109 = arith.addf %107, %108 : vector<8x128xf32>
    %110 = vector.extract_strided_slice %109 {offsets = [0, 0], sizes = [8, 96], strides = [1, 1]} : vector<8x128xf32> to vector<8x96xf32>
    %111 = arith.negf %110 : vector<8x96xf32>
    %112 = math.exp %111 : vector<8x96xf32>
    %cst_18 = arith.constant 1.000000e+00 : f32
    %113 = vector.broadcast %cst_18 : f32 to vector<8x96xf32>
    %114 = arith.addf %113, %112 : vector<8x96xf32>
    %115 = arith.divf %113, %114 : vector<8x96xf32>
    %116 = vector.extract_strided_slice %109 {offsets = [0, 96], sizes = [8, 32], strides = [1, 1]} : vector<8x128xf32> to vector<8x32xf32>
    %117 = math.tanh %116 : vector<8x32xf32>
    %118 = vector.extract_strided_slice %115 {offsets = [0, 0], sizes = [8, 32], strides = [1, 1]} : vector<8x96xf32> to vector<8x32xf32>
    %119 = vector.extract_strided_slice %115 {offsets = [0, 32], sizes = [8, 32], strides = [1, 1]} : vector<8x96xf32> to vector<8x32xf32>
    %120 = vector.extract_strided_slice %115 {offsets = [0, 64], sizes = [8, 32], strides = [1, 1]} : vector<8x96xf32> to vector<8x32xf32>
    %121 = arith.mulf %119, %100 : vector<8x32xf32>
    %122 = arith.mulf %118, %117 : vector<8x32xf32>
    %123 = arith.addf %121, %122 : vector<8x32xf32>
    %124 = math.tanh %123 : vector<8x32xf32>
    %125 = arith.mulf %120, %124 : vector<8x32xf32>
    %126 = vector.extract_strided_slice %12 {offsets = [0, 4], sizes = [8, 1], strides = [1, 1]} : vector<8x8xi1> to vector<8x1xi1>
    %127 = vector.shape_cast %126 : vector<8x1xi1> to vector<8x1xi1>
    %128 = vector.broadcast %127 : vector<8x1xi1> to vector<8x32xi1>
    %129 = arith.select %128, %125, %106 : vector<8x32xi1>, vector<8x32xf32>
    %130 = vector.extract_strided_slice %7 {offsets = [40, 0], sizes = [8, 128], strides = [1, 1]} : vector<64x128xf32> to vector<8x128xf32>
    %cst_19 = arith.constant dense<0.000000e+00> : vector<8x128xf32>
    %131 = tpu.matmul %129, %8, %cst_19 {dimension_numbers = #tpu.dot_dimension_numbers<[1], [0], [0], [1], [0, 0, 1, 1], [], []>} : vector<8x32xf32>, vector<32x128xf32>, vector<8x128xf32> -> vector<8x128xf32>
    %132 = arith.addf %130, %131 : vector<8x128xf32>
    %133 = vector.extract_strided_slice %132 {offsets = [0, 0], sizes = [8, 96], strides = [1, 1]} : vector<8x128xf32> to vector<8x96xf32>
    %134 = arith.negf %133 : vector<8x96xf32>
    %135 = math.exp %134 : vector<8x96xf32>
    %cst_20 = arith.constant 1.000000e+00 : f32
    %136 = vector.broadcast %cst_20 : f32 to vector<8x96xf32>
    %137 = arith.addf %136, %135 : vector<8x96xf32>
    %138 = arith.divf %136, %137 : vector<8x96xf32>
    %139 = vector.extract_strided_slice %132 {offsets = [0, 96], sizes = [8, 32], strides = [1, 1]} : vector<8x128xf32> to vector<8x32xf32>
    %140 = math.tanh %139 : vector<8x32xf32>
    %141 = vector.extract_strided_slice %138 {offsets = [0, 0], sizes = [8, 32], strides = [1, 1]} : vector<8x96xf32> to vector<8x32xf32>
    %142 = vector.extract_strided_slice %138 {offsets = [0, 32], sizes = [8, 32], strides = [1, 1]} : vector<8x96xf32> to vector<8x32xf32>
    %143 = vector.extract_strided_slice %138 {offsets = [0, 64], sizes = [8, 32], strides = [1, 1]} : vector<8x96xf32> to vector<8x32xf32>
    %144 = arith.mulf %142, %123 : vector<8x32xf32>
    %145 = arith.mulf %141, %140 : vector<8x32xf32>
    %146 = arith.addf %144, %145 : vector<8x32xf32>
    %147 = math.tanh %146 : vector<8x32xf32>
    %148 = arith.mulf %143, %147 : vector<8x32xf32>
    %149 = vector.extract_strided_slice %12 {offsets = [0, 5], sizes = [8, 1], strides = [1, 1]} : vector<8x8xi1> to vector<8x1xi1>
    %150 = vector.shape_cast %149 : vector<8x1xi1> to vector<8x1xi1>
    %151 = vector.broadcast %150 : vector<8x1xi1> to vector<8x32xi1>
    %152 = arith.select %151, %148, %129 : vector<8x32xi1>, vector<8x32xf32>
    %153 = vector.extract_strided_slice %7 {offsets = [48, 0], sizes = [8, 128], strides = [1, 1]} : vector<64x128xf32> to vector<8x128xf32>
    %cst_21 = arith.constant dense<0.000000e+00> : vector<8x128xf32>
    %154 = tpu.matmul %152, %8, %cst_21 {dimension_numbers = #tpu.dot_dimension_numbers<[1], [0], [0], [1], [0, 0, 1, 1], [], []>} : vector<8x32xf32>, vector<32x128xf32>, vector<8x128xf32> -> vector<8x128xf32>
    %155 = arith.addf %153, %154 : vector<8x128xf32>
    %156 = vector.extract_strided_slice %155 {offsets = [0, 0], sizes = [8, 96], strides = [1, 1]} : vector<8x128xf32> to vector<8x96xf32>
    %157 = arith.negf %156 : vector<8x96xf32>
    %158 = math.exp %157 : vector<8x96xf32>
    %cst_22 = arith.constant 1.000000e+00 : f32
    %159 = vector.broadcast %cst_22 : f32 to vector<8x96xf32>
    %160 = arith.addf %159, %158 : vector<8x96xf32>
    %161 = arith.divf %159, %160 : vector<8x96xf32>
    %162 = vector.extract_strided_slice %155 {offsets = [0, 96], sizes = [8, 32], strides = [1, 1]} : vector<8x128xf32> to vector<8x32xf32>
    %163 = math.tanh %162 : vector<8x32xf32>
    %164 = vector.extract_strided_slice %161 {offsets = [0, 0], sizes = [8, 32], strides = [1, 1]} : vector<8x96xf32> to vector<8x32xf32>
    %165 = vector.extract_strided_slice %161 {offsets = [0, 32], sizes = [8, 32], strides = [1, 1]} : vector<8x96xf32> to vector<8x32xf32>
    %166 = vector.extract_strided_slice %161 {offsets = [0, 64], sizes = [8, 32], strides = [1, 1]} : vector<8x96xf32> to vector<8x32xf32>
    %167 = arith.mulf %165, %146 : vector<8x32xf32>
    %168 = arith.mulf %164, %163 : vector<8x32xf32>
    %169 = arith.addf %167, %168 : vector<8x32xf32>
    %170 = math.tanh %169 : vector<8x32xf32>
    %171 = arith.mulf %166, %170 : vector<8x32xf32>
    %172 = vector.extract_strided_slice %12 {offsets = [0, 6], sizes = [8, 1], strides = [1, 1]} : vector<8x8xi1> to vector<8x1xi1>
    %173 = vector.shape_cast %172 : vector<8x1xi1> to vector<8x1xi1>
    %174 = vector.broadcast %173 : vector<8x1xi1> to vector<8x32xi1>
    %175 = arith.select %174, %171, %152 : vector<8x32xi1>, vector<8x32xf32>
    %176 = vector.extract_strided_slice %7 {offsets = [56, 0], sizes = [8, 128], strides = [1, 1]} : vector<64x128xf32> to vector<8x128xf32>
    %cst_23 = arith.constant dense<0.000000e+00> : vector<8x128xf32>
    %177 = tpu.matmul %175, %8, %cst_23 {dimension_numbers = #tpu.dot_dimension_numbers<[1], [0], [0], [1], [0, 0, 1, 1], [], []>} : vector<8x32xf32>, vector<32x128xf32>, vector<8x128xf32> -> vector<8x128xf32>
    %178 = arith.addf %176, %177 : vector<8x128xf32>
    %179 = vector.extract_strided_slice %178 {offsets = [0, 0], sizes = [8, 96], strides = [1, 1]} : vector<8x128xf32> to vector<8x96xf32>
    %180 = arith.negf %179 : vector<8x96xf32>
    %181 = math.exp %180 : vector<8x96xf32>
    %cst_24 = arith.constant 1.000000e+00 : f32
    %182 = vector.broadcast %cst_24 : f32 to vector<8x96xf32>
    %183 = arith.addf %182, %181 : vector<8x96xf32>
    %184 = arith.divf %182, %183 : vector<8x96xf32>
    %185 = vector.extract_strided_slice %178 {offsets = [0, 96], sizes = [8, 32], strides = [1, 1]} : vector<8x128xf32> to vector<8x32xf32>
    %186 = math.tanh %185 : vector<8x32xf32>
    %187 = vector.extract_strided_slice %184 {offsets = [0, 0], sizes = [8, 32], strides = [1, 1]} : vector<8x96xf32> to vector<8x32xf32>
    %188 = vector.extract_strided_slice %184 {offsets = [0, 32], sizes = [8, 32], strides = [1, 1]} : vector<8x96xf32> to vector<8x32xf32>
    %189 = vector.extract_strided_slice %184 {offsets = [0, 64], sizes = [8, 32], strides = [1, 1]} : vector<8x96xf32> to vector<8x32xf32>
    %190 = arith.mulf %188, %169 : vector<8x32xf32>
    %191 = arith.mulf %187, %186 : vector<8x32xf32>
    %192 = arith.addf %190, %191 : vector<8x32xf32>
    %193 = math.tanh %192 : vector<8x32xf32>
    %194 = arith.mulf %189, %193 : vector<8x32xf32>
    %195 = vector.extract_strided_slice %12 {offsets = [0, 7], sizes = [8, 1], strides = [1, 1]} : vector<8x8xi1> to vector<8x1xi1>
    %196 = vector.shape_cast %195 : vector<8x1xi1> to vector<8x1xi1>
    %197 = vector.broadcast %196 : vector<8x1xi1> to vector<8x32xi1>
    %198 = arith.select %197, %194, %175 : vector<8x32xi1>, vector<8x32xf32>
    %c0_25 = arith.constant 0 : index
    %c0_26 = arith.constant 0 : index
    %199 = vector.load %arg5[%c0_25, %c0_26] : memref<8x32xf32, #tpu.memory_space<vmem>>, vector<8x32xf32>
    tpu.vector_store %arg5[%c0_25, %c0_26], %198 {strides = array<i32>} : memref<8x32xf32, #tpu.memory_space<vmem>>, vector<8x32xf32>,
    return
  }
  func.func @transform_0(%arg0: i32) -> (i32, i32) {
    %c0_i32 = arith.constant 0 : i32
    %c0_i32_0 = arith.constant 0 : i32
    %c0_i32_1 = arith.constant 0 : i32
    return %c0_i32, %c0_i32_0 : i32, i32
  }
  func.func @transform_1(%arg0: i32) -> (i32, i32) {
    %c0_i32 = arith.constant 0 : i32
    %c0_i32_0 = arith.constant 0 : i32
    %c0_i32_1 = arith.constant 0 : i32
    return %c0_i32, %c0_i32_0 : i32, i32
  }
  func.func @transform_2(%arg0: i32) -> (i32, i32) {
    %c0_i32 = arith.constant 0 : i32
    %c0_i32_0 = arith.constant 0 : i32
    %c0_i32_1 = arith.constant 0 : i32
    return %c0_i32, %c0_i32_0 : i32, i32
  }
  func.func @transform_3(%arg0: i32) -> (i32, i32) {
    %c0_i32 = arith.constant 0 : i32
    %c0_i32_0 = arith.constant 0 : i32
    %c0_i32_1 = arith.constant 0 : i32
    return %c0_i32, %c0_i32_0 : i32, i32
  }
  func.func @transform_4(%arg0: i32) -> (i32, i32) {
    %c0_i32 = arith.constant 0 : i32
    %c0_i32_0 = arith.constant 0 : i32
    %c0_i32_1 = arith.constant 0 : i32
    return %c0_i32, %c0_i32_0 : i32, i32
  }
}

</mosaic_0001>

<bundles_post_ra>
// kernel: lstm_final_hidden.1
= control target key start
LH: loop header
LB: loop body
LE: loop exit
PB: predicated region body
PF: predicated region fallthrough
CT: control target
= control target key end

     0   :  { %v1462_v2 = vmov 0   ;;  %v1463_v6 = vmov 0.0|0.0   ;;  %s1723_s0 = inlined_call_operand.vmem [shape: s32[8,1], index: 0, kind: input, shape index: {}]   ;;  %s1724_s1 = inlined_call_operand.vmem [shape: s32[64,1], index: 1, kind: input, shape index: {}]   ;;  %s1725_s2 = inlined_call_operand.vmem [shape: f32[64,128], index: 2, kind: input, shape index: {}]   ;;  %s1726_s3 = inlined_call_operand.vmem [shape: f32[32,128], index: 3, kind: input, shape index: {}]   ;;  %s1727_s4 = inlined_call_operand.hbm [shape: f32[8,32], index: 4, kind: output, shape index: {}]  }
   0x1   :  { %v18_v0 = vld [vmem:[%s1724_s1] sm:$0xff]  ;;  %1363 = vset.pattern.permute.xlu0 %v1462_v2  ;;  %v77_v3 = vld [vmem:[%s1725_s2 + $0x8] sm:$0xff]  ;;  %v78_v4 = vld [vmem:[%s1725_s2 + $0x10] sm:$0xff]  ;;  %1301 = vmatprep.subr.bf16.mxu1 %v1463_v6 }
   0x2   :  { %v76_v1 = vld [vmem:[%s1725_s2] sm:$0xff]  ;;  %v79_v5 = vld [vmem:[%s1725_s2 + $0x18] sm:$0xff]  ;;  %29 = vperm.xlu0 %1363, %v18_v0   ;;  %v19_v7 = vld [vmem:[%s1724_s1 + $0x8] sm:$0xff]  ;;  %1364 = vset.pattern.permute.xlu1 %v1462_v2 }
   0x3   :  { %v1285_v8 = vpack.c.bf16 %v77_v3, %v76_v1  ;;  %v1289_v9 = vpack.c.bf16 %v79_v5, %v78_v4  ;;  %v214_v10 = vld [vmem:[%s1726_s3] sm:$0xff]  ;;  %v81_v12 = vld [vmem:[%s1725_s2 + $0x28] sm:$0xff]  ;;  %v216_v15 = vld [vmem:[%s1726_s3 + $0x10] sm:$0xff] }
   0x4   :  { %v80_v11 = vld [vmem:[%s1725_s2 + $0x20] sm:$0xff]  ;;  %v215_v13 = vld [vmem:[%s1726_s3 + $0x8] sm:$0xff]  ;;  %v217_v16 = vld [vmem:[%s1726_s3 + $0x18] sm:$0xff] }
   0x5   :  { %1286 = vmatprep.subr.bf16.mxu0 %v1285_v8  ;;  %v1534_v14 = vpack.c.bf16 %v215_v13, %v214_v10 }
   0x6   :  { %9 = vsyncpa [#allocation3], 0  ;;  %1288 = vmatpush3.bf16.msra.mxu0 %v1285_v8  ;;  %32 = vperm.xlu0 %1363, %v19_v7   ;;  %v1293_v17 = vpack.c.bf16 %v81_v12, %v80_v11  ;;  %v82_v18 = vld [vmem:[%s1725_s2 + $0x30] sm:$0xff]  ;;  %v83_v19 = vld [vmem:[%s1725_s2 + $0x38] sm:$0xff]  ;;  %v1549_v20 = vpack.c.bf16 %v217_v16, %v216_v15  ;;  %vm1464_vm0 = vmmov 0   ;;  %v1465_v21 = vmov 0.0  }
   0x7   :  { %1290 = vmatprep.subr.bf16.mxu0 %v1289_v9  ;;  %1303 = vmatpush3.bf16.msra.mxu1 %v1534_v14  ;;  %v1297_v22 = vpack.c.bf16 %v83_v19, %v82_v18  ;;  %v26_v23 = vlaneseq  ;;  %vm84_vm1 = vcmask 523264   ;;  %s1466_s2 = smov 32   ;;  %v218_v35 = vld [vmem:[%s1723_s0] sm:$0xff]  ;;  %s1467_s0 = smov 64   ;;  %vm223_vm6 = vcmask 261120   ;;  %v21_v0 = vld [vmem:[%s1724_s1 + $0x18] sm:$0xff] }
   0x8   :  { %1205 = vmatprep.mubr.msk.f32.mxu1 %vm1464_vm0, %v1465_v21  ;;  %1304 = vmatprep.subr.bf16.mxu1 %v1463_v6  ;;  %v1468_v53 = vmov 1   ;;  %v20_v7 = vld [vmem:[%s1724_s1 + $0x10] sm:$0xff]  ;;  %v1469_v18 = vmov 2  }
   0x9   :  { %v1564_v24 = vand.u32 127, %v26_v23 }
   0xa   :  { %1292 = vmatpush3.bf16.msra.mxu0 %v1289_v9  ;;  %1365 = vset.pattern.permute.xlu0 %v1468_v53 }
   0xb   :  { %1294 = vmatprep.subr.bf16.mxu0 %v1293_v17  ;;  %1306 = vmatpush3.bf16.msra.mxu1 %v1549_v20 }
   0xc   :  { %1307 = vmatprep.subr.bf16.mxu1 %v1463_v6 }
   0xe   :  { %1296 = vmatpush3.bf16.msra.mxu0 %v1293_v17  ;;  %1206 = vmatmul.mubr.f32.vlgmr.msra.gmra.mrb[0].mxu1 %v1465_v21 }
   0xf   :  { %1298 = vmatprep.subr.bf16.mxu0 %v1297_v22  ;;  %1309 = vmatpush3.bf16.msra.mxu1 %v1534_v14 }
  0x10   :  { %1216 = vmatprep.mubr.msk.f32.mxu1 %vm1464_vm0, %v1465_v21  ;;  %1310 = vmatprep.subr.bf16.mxu1 %v1463_v6 }
  0x12   :  { %1300 = vmatpush3.bf16.msra.mxu0 %v1297_v22 }
  0x13   :  { %1319 = vmatprep.subr.bf16.mxu0 %v1463_v6  ;;  %1312 = vmatpush3.bf16.msra.mxu1 %v1549_v20 }
  0x14   :  { %1313 = vmatprep.subr.bf16.mxu1 %v1463_v6 }
  0x81   :  { %v30_v25 = vpop.permute.xlu0 %29 }
  0x82   :  { %vm52_vm2 = vcmp.eq.s32.totalorder %v30_v25, %v1564_v24 }
  0x83   :  { %v1082_v26 = vsel %vm52_vm2, 1.0, %v1465_v21 }
  0x84   :  { %1185 = vmatprep.mubr.msk.f32.mxu0 %vm84_vm1, %v1082_v26 }
  0x85   :  { %v33_v27 = vpop.permute.xlu0 %32 }
  0x86   :  { %vm53_vm3 = vcmp.eq.s32.totalorder %v33_v27, %v1564_v24 }
  0x87   :  { %v1083_v28 = vsel %vm53_vm3, 1.0, %v1465_v21 }
  0x88   :  { %1186 = vmatmul.mubr.msk.f32.vlgmr.msra.gmra.mrb[0].mxu0 %vm84_vm1, %v1083_v28 }
  0x89   :  { %1321 = vmatpush3.bf16.msra.mxu0 %v1534_v14 }
  0x8a   :  { %1322 = vmatprep.subr.bf16.mxu0 %v1463_v6 }
  0x8d   :  { %1324 = vmatpush3.bf16.msra.mxu0 %v1549_v20 }
  0x8e   :  { %1331 = vmatprep.subr.bf16.mxu0 %v1463_v6 }
  0xe1   :  { %v293_v29 = vpop.f32.mrb[0].mxu1 }
  0xe2   :  { %v1207_v30 = vpop.f32.mrb[1].mxu1 }
 0x15b   :  { %v1187_v31 = vpop.f32.mrb[0].mxu0 }
 0x15c   :  { %v175_v32 = vpop.f32.mrb[1].mxu0 }
 0x15d   :  { %v297_v33 = vadd.f32 %v293_v29, %v175_v32 }
 0x15f   :  { %1374 = vtanh.f32 %v297_v33  ;;  %v1098_v36 = vmul.f32 -1.442695, %v297_v33 }
 0x161   :  { %1376 = vpow2.f32 %v1098_v36 }
 0x169   :  { %v1375_v34 = vpop.eup %1374 }
 0x16a   :  { %307 = vrot.lane.b32.xlu1 %v1375_v34, %s1466_s2  ;;  %v22_v34 = vld [vmem:[%s1724_s1 + $0x20] sm:$0xff] }
 0x16b   :  { %v1377_v37 = vpop.eup %1376 }
 0x16c   :  { %v301_v38 = vadd.f32 1.0, %v1377_v37 }
 0x16e   :  { %220 = vperm.xlu1 %1364, %v218_v35   ;;  %1378 = vrcp.f32 %v301_v38  ;;  %v24_v35 = vld [vmem:[%s1724_s1 + $0x30] sm:$0xff] }
 0x178   :  { %v1379_v39 = vpop.eup %1378 }
 0x179   :  { %v305_v44 = vmul.f32 0.0, %v1379_v39 }
 0x1dc   :  { %v308_v40 = vpop.permute.xlu1 %307 }
 0x1dd   :  { %v310_v41 = vmul.f32 %v1379_v39, %v308_v40 }
 0x1df   :  { %312 = vrot.lane.b32.xlu0 %v310_v41, %s1466_s2  ;;  %v23_v41 = vld [vmem:[%s1724_s1 + $0x28] sm:$0xff] }
 0x1ed   :  { %v221_v42 = vpop.permute.xlu1 %220 }
 0x1ee   :  { %vm222_vm4 = vcmp.gt.s32.totalorder %v221_v42, %v1564_v24 }
 0x1ef   :  { %v1583_v43 = vsel %vm222_vm4, 1, %v1462_v2 }
 0x1f0   :  { %324 = vperm.xlu1 %1364, %v1583_v43  }
 0x251   :  { %v313_v45 = vpop.permute.xlu0 %312 }
 0x252   :  { %v315_v46 = vadd.f32 %v313_v45, %v305_v44  ;;  %v25_v44 = vld [vmem:[%s1724_s1 + $0x38] sm:$0xff]  ;;  %s1475_s1 = smov [#allocation2]  }
 0x253   :  { %s1074_s30 = sshll.u32 %s1475_s1, 4  ;;  %s1075_s30 = int_to_ptr.vmem [resolvable:$true] %s1074_s30 }
 0x254   :  { %1380 = vtanh.f32 %v315_v46  ;;  %s1438_s5 = scalar_lea.vmem %s1075_s30, 128  ;;  %p1443_p1 = scmp.lt.s32.totalorder %s1075_s30, %s1075_s30 }
 0x255   :  { %p1439_p0 = scmp.ne.s32.totalorder %s1075_s30, %s1438_s5  ;;  %p1444_p2 = scmp.lt.s32.totalorder %s1438_s5, %s1438_s5 }
 0x257   :  { %p1445_p3 = por %p1444_p2, %p1443_p1 }
 0x259   :  { %p1446_p4 = pnand %p1445_p3, %p1439_p0 }
 0x25e   :  { %v1381_v47 = vpop.eup %1380 }
 0x25f   :  { %318 = vrot.lane.b32.xlu0 %v1381_v47, %s1466_s2 }
 0x26f   :  { %v325_v48 = vpop.permute.xlu1 %324 }
 0x270   :  { %vm326_vm5 = vcmp.eq.s32.totalorder %v325_v48, 1 }
 0x2d1   :  { %v319_v49 = vpop.permute.xlu0 %318 }
 0x2d2   :  { %v321_v50 = vmul.f32 %v1379_v39, %v319_v49 }
 0x2d4   :  { %v327_v51 = vsel %vm326_vm5, %v321_v50, 0.0 }
 0x2d5   :  { %329 = vrot.lane.b32.xlu1 %v327_v51, %s1467_s0 }
 0x347   :  { %v330_v52 = vpop.permute.xlu1 %329 }
 0x348   :  { %1217 = vmatmul.mubr.msk.f32.vlgmr.msra.gmra.mrb[2].mxu1 %vm223_vm6, %v330_v52 }
 0x349   :  { %1315 = vmatpush3.bf16.msra.mxu1 %v1534_v14  ;;  %1227 = vmatprep.mubr.msk.f32.mxu1 %vm1464_vm0, %v1465_v21 }
 0x34a   :  { %1316 = vmatprep.subr.bf16.mxu1 %v1463_v6 }
 0x34d   :  { %1318 = vmatpush3.bf16.msra.mxu1 %v1549_v20 }
 0x34e   :  { %1325 = vmatprep.subr.bf16.mxu1 %v1463_v6 }
 0x41b   :  { %v399_v54 = vpop.f32.mrb[2].mxu1 }
 0x41c   :  { %v403_v55 = vadd.f32 %v1187_v31, %v399_v54  ;;  %v1218_v56 = vpop.f32.mrb[3].mxu1 }
 0x41e   :  { %1382 = vtanh.f32 %v403_v55  ;;  %v1100_v58 = vmul.f32 -1.442695, %v403_v55 }
 0x420   :  { %1384 = vpow2.f32 %v1100_v58 }
 0x428   :  { %v1383_v57 = vpop.eup %1382 }
 0x429   :  { %413 = vrot.lane.b32.xlu0 %v1383_v57, %s1466_s2 }
 0x42a   :  { %v1385_v59 = vpop.eup %1384 }
 0x42b   :  { %v407_v60 = vadd.f32 1.0, %v1385_v59 }
 0x42d   :  { %429 = vperm.xlu0 %1365, %v1583_v43   ;;  %1386 = vrcp.f32 %v407_v60 }
 0x431   :  { %1366 = vset.pattern.permute.xlu0 %v1462_v2 }
 0x432   :  { %38 = vperm.xlu0 %1366, %v21_v0  }
 0x437   :  { %v1387_v61 = vpop.eup %1386 }
 0x438   :  { %v411_v1 = vmul.f32 %v1387_v61, %v315_v46 }
 0x49b   :  { %v414_v62 = vpop.permute.xlu0 %413 }
 0x49c   :  { %v416_v63 = vmul.f32 %v1387_v61, %v414_v62 }
 0x49e   :  { %418 = vrot.lane.b32.xlu1 %v416_v63, %s1466_s2 }
 0x4ac   :  { %v430_v8 = vpop.permute.xlu0 %429 }
 0x4ad   :  { %vm431_vm7 = vcmp.eq.s32.totalorder %v430_v8, 1 }
 0x4b1   :  { %v39_v12 = vpop.permute.xlu0 %38 }
 0x4b2   :  { %vm55_vm8 = vcmp.eq.s32.totalorder %v39_v12, %v1564_v24 }
 0x4b3   :  { %v1085_v15 = vsel %vm55_vm8, 1.0, %v1465_v21 }
 0x510   :  { %v419_v3 = vpop.permute.xlu1 %418 }
 0x511   :  { %v421_v4 = vadd.f32 %v419_v3, %v411_v1 }
 0x513   :  { %1388 = vtanh.f32 %v421_v4 }
 0x51d   :  { %v1389_v5 = vpop.eup %1388 }
 0x51e   :  { %424 = vrot.lane.b32.xlu1 %v1389_v5, %s1466_s2 }
 0x522   :  { %35 = vperm.xlu1 %1364, %v20_v7  }
 0x526   :  { %1367 = vset.pattern.permute.xlu1 %v1469_v18 }
 0x590   :  { %v425_v9 = vpop.permute.xlu1 %424 }
 0x591   :  { %v427_v10 = vmul.f32 %v1387_v61, %v425_v9 }
 0x593   :  { %v432_v11 = vsel %vm431_vm7, %v427_v10, %v327_v51 }
 0x594   :  { %434 = vrot.lane.b32.xlu1 %v432_v11, %s1467_s0 }
 0x5a1   :  { %v36_v13 = vpop.permute.xlu1 %35 }
 0x5a2   :  { %vm54_vm9 = vcmp.eq.s32.totalorder %v36_v13, %v1564_v24 }
 0x5a3   :  { %v1084_v16 = vsel %vm54_vm9, 1.0, %v1465_v21 }
 0x5a4   :  { %1188 = vmatprep.mubr.msk.f32.mxu0 %vm84_vm1, %v1084_v16 }
 0x5a5   :  { %1189 = vmatmul.mubr.msk.f32.gmra.mrb[2].mxu0 %vm84_vm1, %v1085_v15 }
 0x606   :  { %v435_v17 = vpop.permute.xlu1 %434 }
 0x607   :  { %1228 = vmatmul.mubr.msk.f32.vlgmr.msra.gmra.mrb[4].mxu1 %vm223_vm6, %v435_v17  ;;  %v1471_v17 = vmov 4  }
 0x608   :  { %1327 = vmatpush3.bf16.msra.mxu1 %v1534_v14  ;;  %1249 = vmatprep.mubr.msk.f32.mxu1 %vm1464_vm0, %v1465_v21 }
 0x609   :  { %1328 = vmatprep.subr.bf16.mxu1 %v1463_v6 }
 0x60c   :  { %1330 = vmatpush3.bf16.msra.mxu1 %v1549_v20 }
 0x60d   :  { %1337 = vmatprep.subr.bf16.mxu1 %v1463_v6 }
 0x678   :  { %v1620_v19 = vpop.f32.mrb[2].mxu0 }
 0x679   :  { %v185_v22 = vpop.f32.mrb[3].mxu0 }
 0x6da   :  { %v504_v23 = vpop.f32.mrb[4].mxu1 }
 0x6db   :  { %v508_v25 = vadd.f32 %v504_v23, %v185_v22  ;;  %v1229_v26 = vpop.f32.mrb[5].mxu1 }
 0x6dd   :  { %1390 = vtanh.f32 %v508_v25  ;;  %v1102_v28 = vmul.f32 -1.442695, %v508_v25 }
 0x6df   :  { %1392 = vpow2.f32 %v1102_v28 }
 0x6e7   :  { %v1391_v27 = vpop.eup %1390 }
 0x6e8   :  { %518 = vrot.lane.b32.xlu1 %v1391_v27, %s1466_s2 }
 0x6e9   :  { %v1393_v29 = vpop.eup %1392 }
 0x6ea   :  { %v512_v30 = vadd.f32 1.0, %v1393_v29 }
 0x6ec   :  { %534 = vperm.xlu1 %1367, %v1583_v43   ;;  %1394 = vrcp.f32 %v512_v30 }
 0x6f0   :  { %1368 = vset.pattern.permute.xlu1 %v1462_v2 }
 0x6f1   :  { %41 = vperm.xlu1 %1368, %v22_v34  }
 0x6f5   :  { %47 = vperm.xlu1 %1368, %v24_v35  }
 0x6f6   :  { %v1395_v31 = vpop.eup %1394 }
 0x6f7   :  { %v516_v2 = vmul.f32 %v1395_v31, %v421_v4 }
 0x75a   :  { %v519_v32 = vpop.permute.xlu1 %518 }
 0x75b   :  { %v521_v33 = vmul.f32 %v1395_v31, %v519_v32 }
 0x75d   :  { %523 = vrot.lane.b32.xlu0 %v521_v33, %s1466_s2 }
 0x76b   :  { %v535_v38 = vpop.permute.xlu1 %534 }
 0x76c   :  { %vm536_vm11 = vcmp.eq.s32.totalorder %v535_v38, 1 }
 0x770   :  { %v42_v40 = vpop.permute.xlu1 %41 }
 0x771   :  { %vm56_vm10 = vcmp.eq.s32.totalorder %v42_v40, %v1564_v24 }
 0x772   :  { %v1086_v42 = vsel %vm56_vm10, 1.0, %v1465_v21 }
 0x773   :  { %1191 = vmatprep.mubr.msk.f32.mxu0 %vm84_vm1, %v1086_v42 }
 0x774   :  { %v48_v48 = vpop.permute.xlu1 %47 }
 0x775   :  { %vm58_vm12 = vcmp.eq.s32.totalorder %v48_v48, %v1564_v24 }
 0x776   :  { %v1088_v50 = vsel %vm58_vm12, 1.0, %v1465_v21 }
 0x7cf   :  { %v524_v36 = vpop.permute.xlu0 %523 }
 0x7d0   :  { %v526_v37 = vadd.f32 %v524_v36, %v516_v2 }
 0x7d2   :  { %1396 = vtanh.f32 %v526_v37 }
 0x7dc   :  { %v1397_v39 = vpop.eup %1396 }
 0x7dd   :  { %529 = vrot.lane.b32.xlu0 %v1397_v39, %s1466_s2  ;;  %v1472_v39 = vmov 5  }
 0x7e1   :  { %44 = vperm.xlu0 %1366, %v23_v41  }
 0x7e5   :  { %50 = vperm.xlu0 %1366, %v25_v44  }
 0x84f   :  { %v530_v45 = vpop.permute.xlu0 %529 }
 0x850   :  { %v532_v46 = vmul.f32 %v1395_v31, %v530_v45 }
 0x852   :  { %v537_v47 = vsel %vm536_vm11, %v532_v46, %v432_v11 }
 0x853   :  { %539 = vrot.lane.b32.xlu1 %v537_v47, %s1467_s0 }
 0x860   :  { %v45_v49 = vpop.permute.xlu0 %44 }
 0x861   :  { %vm57_vm13 = vcmp.eq.s32.totalorder %v45_v49, %v1564_v24 }
 0x862   :  { %v1087_v51 = vsel %vm57_vm13, 1.0, %v1465_v21 }
 0x863   :  { %1192 = vmatmul.mubr.msk.f32.gmra.mrb[4].mxu0 %vm84_vm1, %v1087_v51 }
 0x864   :  { %v51_v52 = vpop.permute.xlu0 %50  ;;  %1194 = vmatprep.mubr.msk.f32.mxu0 %vm84_vm1, %v1088_v50 }
 0x865   :  { %vm59_vm14 = vcmp.eq.s32.totalorder %v51_v52, %v1564_v24  ;;  %v1470_v24 = vmov 3  }
 0x866   :  { %v1089_v53 = vsel %vm59_vm14, 1.0, %v1465_v21  ;;  %1369 = vset.pattern.permute.xlu0 %v1470_v24 }
 0x867   :  { %1195 = vmatmul.mubr.msk.f32.gmra.mrb[6].mxu0 %vm84_vm1, %v1089_v53 }
 0x868   :  { %1238 = vmatprep.mubr.msk.f32.mxu0 %vm1464_vm0, %v1465_v21 }
 0x8c5   :  { %v540_v54 = vpop.permute.xlu1 %539 }
 0x8c6   :  { %1239 = vmatmul.mubr.msk.f32.vlgmr.msra.gmra.mrb[8].mxu0 %vm223_vm6, %v540_v54 }
 0x8c7   :  { %1333 = vmatpush3.bf16.msra.mxu0 %v1534_v14  ;;  %1260 = vmatprep.mubr.msk.f32.mxu0 %vm1464_vm0, %v1465_v21 }
 0x8c8   :  { %1334 = vmatprep.subr.bf16.mxu0 %v1463_v6 }
 0x8cb   :  { %1336 = vmatpush3.bf16.msra.mxu0 %v1549_v20 }
 0x8cc   :  { %1343 = vmatprep.subr.bf16.mxu0 %v1463_v6 }
 0x936   :  { %v1661_v55 = vpop.f32.mrb[4].mxu0 }
 0x937   :  { %v195_v56 = vpop.f32.mrb[5].mxu0 }
 0x93a   :  { %v1663_v57 = vpop.f32.mrb[6].mxu0 }
 0x93b   :  { %v1665_v58 = vpop.f32.mrb[7].mxu0 }
 0x999   :  { %v609_v59 = vpop.f32.mrb[8].mxu0 }
 0x99a   :  { %v613_v60 = vadd.f32 %v1620_v19, %v609_v59  ;;  %v1240_v61 = vpop.f32.mrb[9].mxu0 }
 0x99c   :  { %1398 = vtanh.f32 %v613_v60  ;;  %v1104_v63 = vmul.f32 -1.442695, %v613_v60 }
 0x99e   :  { %1400 = vpow2.f32 %v1104_v63 }
 0x9a6   :  { %v1399_v62 = vpop.eup %1398 }
 0x9a7   :  { %623 = vrot.lane.b32.xlu0 %v1399_v62, %s1466_s2 }
 0x9a8   :  { %v1401_v0 = vpop.eup %1400 }
 0x9a9   :  { %v617_v1 = vadd.f32 1.0, %v1401_v0 }
 0x9ab   :  { %639 = vperm.xlu0 %1369, %v1583_v43   ;;  %1402 = vrcp.f32 %v617_v1 }
 0x9af   :  { %1370 = vset.pattern.permute.xlu0 %v1471_v17 }
 0x9b5   :  { %v1403_v3 = vpop.eup %1402 }
 0x9b6   :  { %v621_v7 = vmul.f32 %v1403_v3, %v526_v37 }
 0xa19   :  { %v624_v4 = vpop.permute.xlu0 %623 }
 0xa1a   :  { %v626_v5 = vmul.f32 %v1403_v3, %v624_v4 }
 0xa1c   :  { %628 = vrot.lane.b32.xlu1 %v626_v5, %s1466_s2 }
 0xa2a   :  { %v640_v11 = vpop.permute.xlu0 %639 }
 0xa2b   :  { %vm641_vm15 = vcmp.eq.s32.totalorder %v640_v11, 1 }
 0xa8e   :  { %v629_v8 = vpop.permute.xlu1 %628 }
 0xa8f   :  { %v631_v9 = vadd.f32 %v629_v8, %v621_v7 }
 0xa91   :  { %1404 = vtanh.f32 %v631_v9 }
 0xa9b   :  { %v1405_v10 = vpop.eup %1404 }
 0xa9c   :  { %634 = vrot.lane.b32.xlu1 %v1405_v10, %s1466_s2 }
 0xb0e   :  { %v635_v12 = vpop.permute.xlu1 %634 }
 0xb0f   :  { %v637_v13 = vmul.f32 %v1403_v3, %v635_v12 }
 0xb11   :  { %v642_v15 = vsel %vm641_vm15, %v637_v13, %v537_v47 }
 0xb12   :  { %644 = vrot.lane.b32.xlu1 %v642_v15, %s1467_s0 }
 0xb84   :  { %v645_v16 = vpop.permute.xlu1 %644 }
 0xb85   :  { %1250 = vmatmul.mubr.msk.f32.vlgmr.msra.gmra.mrb[6].mxu1 %vm223_vm6, %v645_v16 }
 0xb86   :  { %1339 = vmatpush3.bf16.msra.mxu1 %v1534_v14  ;;  %1271 = vmatprep.mubr.msk.f32.mxu1 %vm1464_vm0, %v1465_v21 }
 0xb87   :  { %1340 = vmatprep.subr.bf16.mxu1 %v1463_v6 }
 0xb8a   :  { %1342 = vmatpush3.bf16.msra.mxu1 %v1549_v20 }
 0xc58   :  { %v714_v18 = vpop.f32.mrb[6].mxu1 }
 0xc59   :  { %v718_v19 = vadd.f32 %v714_v18, %v195_v56  ;;  %v1251_v22 = vpop.f32.mrb[7].mxu1 }
 0xc5b   :  { %1406 = vtanh.f32 %v718_v19  ;;  %v1106_v25 = vmul.f32 -1.442695, %v718_v19 }
 0xc5d   :  { %1408 = vpow2.f32 %v1106_v25 }
 0xc65   :  { %v1407_v23 = vpop.eup %1406 }
 0xc66   :  { %728 = vrot.lane.b32.xlu0 %v1407_v23, %s1466_s2 }
 0xc67   :  { %v1409_v26 = vpop.eup %1408 }
 0xc68   :  { %v722_v27 = vadd.f32 1.0, %v1409_v26 }
 0xc6a   :  { %744 = vperm.xlu0 %1370, %v1583_v43   ;;  %1410 = vrcp.f32 %v722_v27 }
 0xc6e   :  { %1371 = vset.pattern.permute.xlu0 %v1472_v39 }
 0xc74   :  { %v1411_v28 = vpop.eup %1410 }
 0xc75   :  { %v726_v31 = vmul.f32 %v1411_v28, %v631_v9 }
 0xcd8   :  { %v729_v29 = vpop.permute.xlu0 %728 }
 0xcd9   :  { %v731_v30 = vmul.f32 %v1411_v28, %v729_v29 }
 0xcdb   :  { %733 = vrot.lane.b32.xlu1 %v731_v30, %s1466_s2 }
 0xce9   :  { %v745_v35 = vpop.permute.xlu0 %744 }
 0xcea   :  { %vm746_vm1 = vcmp.eq.s32.totalorder %v745_v35, 1 }
 0xd4d   :  { %v734_v32 = vpop.permute.xlu1 %733 }
 0xd4e   :  { %v736_v33 = vadd.f32 %v734_v32, %v726_v31 }
 0xd50   :  { %1412 = vtanh.f32 %v736_v33 }
 0xd5a   :  { %v1413_v34 = vpop.eup %1412 }
 0xd5b   :  { %739 = vrot.lane.b32.xlu1 %v1413_v34, %s1466_s2 }
 0xdcd   :  { %v740_v2 = vpop.permute.xlu1 %739 }
 0xdce   :  { %v742_v36 = vmul.f32 %v1411_v28, %v740_v2 }
 0xdd0   :  { %v747_v37 = vsel %vm746_vm1, %v742_v36, %v642_v15  ;;  %v1474_v15 = vmov 7  }
 0xdd1   :  { %749 = vrot.lane.b32.xlu1 %v747_v37, %s1467_s0 }
 0xe43   :  { %v750_v38 = vpop.permute.xlu1 %749 }
 0xe44   :  { %1261 = vmatmul.mubr.msk.f32.vlgmr.msra.gmra.mrb[10].mxu0 %vm223_vm6, %v750_v38 }
 0xe45   :  { %1345 = vmatpush3.bf16.msra.mxu0 %v1534_v14  ;;  %1282 = vmatprep.mubr.msk.f32.mxu0 %vm1464_vm0, %v1465_v21 }
 0xe46   :  { %1346 = vmatprep.subr.bf16.mxu0 %v1463_v6 }
 0xe49   :  { %1348 = vmatpush3.bf16.msra.mxu0 %v1549_v20 }
 0xf17   :  { %v819_v40 = vpop.f32.mrb[10].mxu0 }
 0xf18   :  { %v823_v41 = vadd.f32 %v1661_v55, %v819_v40  ;;  %v1262_v42 = vpop.f32.mrb[11].mxu0  ;;  %v1473_v55 = vmov 6  }
 0xf1a   :  { %1414 = vtanh.f32 %v823_v41  ;;  %v1108_v14 = vmul.f32 -1.442695, %v823_v41 }
 0xf1c   :  { %1416 = vpow2.f32 %v1108_v14 }
 0xf24   :  { %v1415_v44 = vpop.eup %1414 }
 0xf25   :  { %833 = vrot.lane.b32.xlu0 %v1415_v44, %s1466_s2 }
 0xf26   :  { %v1417_v45 = vpop.eup %1416 }
 0xf27   :  { %v827_v21 = vadd.f32 1.0, %v1417_v45 }
 0xf29   :  { %849 = vperm.xlu0 %1371, %v1583_v43   ;;  %1418 = vrcp.f32 %v827_v21 }
 0xf2d   :  { %1372 = vset.pattern.permute.xlu0 %v1473_v55 }
 0xf33   :  { %v1419_v6 = vpop.eup %1418 }
 0xf34   :  { %v831_v47 = vmul.f32 %v1419_v6, %v736_v33 }
 0xf97   :  { %v834_v46 = vpop.permute.xlu0 %833 }
 0xf98   :  { %v836_v20 = vmul.f32 %v1419_v6, %v834_v46 }
 0xf9a   :  { %838 = vrot.lane.b32.xlu1 %v836_v20, %s1466_s2 }
 0xfa8   :  { %v850_v51 = vpop.permute.xlu0 %849 }
 0xfa9   :  { %vm851_vm0 = vcmp.eq.s32.totalorder %v850_v51, 1 }
0x100c   :  { %v839_v48 = vpop.permute.xlu1 %838 }
0x100d   :  { %v841_v49 = vadd.f32 %v839_v48, %v831_v47 }
0x100f   :  { %1420 = vtanh.f32 %v841_v49 }
0x1019   :  { %v1421_v50 = vpop.eup %1420 }
0x101a   :  { %844 = vrot.lane.b32.xlu1 %v1421_v50, %s1466_s2 }
0x108c   :  { %v845_v52 = vpop.permute.xlu1 %844 }
0x108d   :  { %v847_v53 = vmul.f32 %v1419_v6, %v845_v52 }
0x108f   :  { %v852_v54 = vsel %vm851_vm0, %v847_v53, %v747_v37 }
0x1090   :  { %854 = vrot.lane.b32.xlu1 %v852_v54, %s1467_s0 }
0x1102   :  { %v855_v24 = vpop.permute.xlu1 %854 }
0x1103   :  { %1272 = vmatmul.mubr.msk.f32.vlgmr.msra.gmra.mrb[8].mxu1 %vm223_vm6, %v855_v24 }
0x11d6   :  { %v924_v56 = vpop.f32.mrb[8].mxu1 }
0x11d7   :  { %v928_v59 = vadd.f32 %v924_v56, %v1665_v58  ;;  %v1273_v60 = vpop.f32.mrb[9].mxu1 }
0x11d9   :  { %1422 = vtanh.f32 %v928_v59  ;;  %v1110_v62 = vmul.f32 -1.442695, %v928_v59 }
0x11db   :  { %1424 = vpow2.f32 %v1110_v62 }
0x11e3   :  { %v1423_v61 = vpop.eup %1422 }
0x11e4   :  { %938 = vrot.lane.b32.xlu0 %v1423_v61, %s1466_s2 }
0x11e5   :  { %v1425_v63 = vpop.eup %1424 }
0x11e6   :  { %v932_v0 = vadd.f32 1.0, %v1425_v63 }
0x11e8   :  { %954 = vperm.xlu0 %1372, %v1583_v43   ;;  %1426 = vrcp.f32 %v932_v0 }
0x11ec   :  { %1373 = vset.pattern.permute.xlu0 %v1474_v15 }
0x11f2   :  { %v1427_v1 = vpop.eup %1426 }
0x11f3   :  { %v936_v5 = vmul.f32 %v1427_v1, %v841_v49 }
0x1256   :  { %v939_v3 = vpop.permute.xlu0 %938 }
0x1257   :  { %v941_v4 = vmul.f32 %v1427_v1, %v939_v3 }
0x1259   :  { %943 = vrot.lane.b32.xlu1 %v941_v4, %s1466_s2 }
0x1267   :  { %v955_v9 = vpop.permute.xlu0 %954 }
0x1268   :  { %vm956_vm2 = vcmp.eq.s32.totalorder %v955_v9, 1 }
0x12cb   :  { %v944_v7 = vpop.permute.xlu1 %943 }
0x12cc   :  { %v946_v58 = vadd.f32 %v944_v7, %v936_v5 }
0x12ce   :  { %1428 = vtanh.f32 %v946_v58 }
0x12d8   :  { %v1429_v8 = vpop.eup %1428 }
0x12d9   :  { %949 = vrot.lane.b32.xlu1 %v1429_v8, %s1466_s2 }
0x134b   :  { %v950_v10 = vpop.permute.xlu1 %949 }
0x134c   :  { %v952_v11 = vmul.f32 %v1427_v1, %v950_v10 }
0x134e   :  { %v957_v12 = vsel %vm956_vm2, %v952_v11, %v852_v54 }
0x134f   :  { %959 = vrot.lane.b32.xlu1 %v957_v12, %s1467_s0 }
0x13c1   :  { %v960_v13 = vpop.permute.xlu1 %959 }
0x13c2   :  { %1283 = vmatmul.mubr.msk.f32.vlgmr.msra.gmra.mrb[12].mxu0 %vm223_vm6, %v960_v13 }
0x1495   :  { %v1029_v16 = vpop.f32.mrb[12].mxu0 }
0x1496   :  { %v1033_v17 = vadd.f32 %v1663_v57, %v1029_v16  ;;  %v1284_v18 = vpop.f32.mrb[13].mxu0 }
0x1498   :  { %1430 = vtanh.f32 %v1033_v17  ;;  %v1112_v22 = vmul.f32 -1.442695, %v1033_v17 }
0x149a   :  { %1432 = vpow2.f32 %v1112_v22 }
0x14a2   :  { %v1431_v19 = vpop.eup %1430 }
0x14a3   :  { %1043 = vrot.lane.b32.xlu0 %v1431_v19, %s1466_s2 }
0x14a4   :  { %v1433_v23 = vpop.eup %1432 }
0x14a5   :  { %v1037_v25 = vadd.f32 1.0, %v1433_v23 }
0x14a7   :  { %1059 = vperm.xlu0 %1373, %v1583_v43   ;;  %1434 = vrcp.f32 %v1037_v25 }
0x14b1   :  { %v1435_v26 = vpop.eup %1434 }
0x14b2   :  { %v1041_v29 = vmul.f32 %v1435_v26, %v946_v58 }
0x1515   :  { %v1044_v27 = vpop.permute.xlu0 %1043 }
0x1516   :  { %v1046_v28 = vmul.f32 %v1435_v26, %v1044_v27 }
0x1518   :  { %1048 = vrot.lane.b32.xlu1 %v1046_v28, %s1466_s2 }
0x1526   :  { %v1060_v32 = vpop.permute.xlu0 %1059 }
0x1527   :  { %vm1061_vm3 = vcmp.eq.s32.totalorder %v1060_v32, 1 }
0x158a   :  { %v1049_v30 = vpop.permute.xlu1 %1048 }
0x158b   :  { %v1051_v57 = vadd.f32 %v1049_v30, %v1041_v29 }
0x158d   :  { %1436 = vtanh.f32 %v1051_v57 }
0x1597   :  { %v1437_v31 = vpop.eup %1436 }
0x1598   :  { %1054 = vrot.lane.b32.xlu1 %v1437_v31, %s1466_s2 }
0x160a   :  { %v1055_v33 = vpop.permute.xlu1 %1054 }
0x160b   :  { %v1057_v43 = vmul.f32 %v1435_v26, %v1055_v33 }
0x160d   :  { %v1062_v34 = vsel %vm1061_vm3, %v1057_v43, %v957_v12 }
0x160e   :  { %1064 = vrot.lane.b32.xlu1 %v1062_v34, %s1467_s0 }
0x1680   :  { %v1065_v35 = vpop.permute.xlu1 %1064 }
0x1681   :  { %1067 = vst.msk [vmem:[#allocation2] sm:$0xff] %vm223_vm6, %v1065_v35 }
0x1682   :  { %1449 = shalt.err (!%p1446_p4)
}
0x1683   :  { %s1450_s8 = scalar_lea.hbm %s1727_s4, 128 }
0x1684   :  { %p1451_p5 = scmp.ne.s32.totalorder %s1727_s4, %s1450_s8  ;;  %p1454_p6 = scmp.lt.u32.totalorder %s1450_s8, %s1727_s4 }
0x1686   :  { %p1456_p7 = pnand %p1454_p6, %p1451_p5 }
0x1688   :  { %1459 = shalt.err (!%p1456_p7)
}
0x1689   :  { %1077 = dma.vmem_to_hbm [thread:$0]  %s1075_s30, 128, %s1727_s4, [#allocation3]  }
0x168a   :  { %1460 = dma.done.wait [#allocation3], 128  }
0x168b   :  { %1461 = vsyncadd [#allocation3], 4294967168 }
0x168c   :  { %1081 = vsyncpa [#allocation3], 1 }

</bundles_post_ra>
